<compile_context>
chip_gen: v7x
topology: tpu7x:2x2x1
jax: 0.10.0
libtpu: 0.0.40
codegen_flags: <defaults>
</compile_context>

<pallas_src>
from functools import partial

import jax
import jax.numpy as jnp
from jax.experimental import pallas as pl
from jax.experimental.pallas import tpu as pltpu


def _round_up(x: int, m: int) -> int:
    return (x + m - 1) // m * m


def _vmem_budget_bytes() -> int:
    """Per-generation VMEM budget: ~3/4 of physical capacity.

    v7x (64 MiB)  -> ~48 MiB,  v5e/v6e (128 MiB) -> ~96 MiB.
    Falls back to a conservative 48 MiB if the query is unavailable.
    """
    try:
        cap = pltpu.get_tpu_info().vmem_capacity_bytes
    except Exception:  # pragma: no cover - query not available in some modes
        cap = 64 * 1024 * 1024
    return (int(cap) * 3) // 4


def _choose_kn_tiles(H: int, C: int) -> tuple[int, int]:
    """K/N tile sizes (independent of batch, so W/b can be padded at init).

    Dims that fit a single tile are padded to a 128 multiple only (keeps the
    zero-padded W bytes minimal; the MXU pass count is unchanged).  Large dims
    tile at 512 (256-aligned for the v6e/v7x 2x256x256 MXU).
    """
    def tile(d: int) -> int:
        if d >= 512:
            return 512
        return _round_up(d, 128)

    return tile(H), tile(C)


def _choose_tm(B: int, tk: int, tn: int, budget: int,
               x_itemsize: int = 4, w_itemsize: int = 2,
               out_itemsize: int = 4) -> int:
    """Batch tile: the primary knob.  Grow it until the double-buffered
    working set (x f32 + W bf16 + resident f32 output + bias) hits the budget.
    """
    fixed = 2 * tk * tn * w_itemsize + 2 * 8 * tn * 4     # W double-buffer + bias
    per_row = 2 * tk * x_itemsize + 2 * tn * out_itemsize  # x + output per tm row
    tm_max = max(8, (budget - fixed) // per_row)
    tm_max = max(8, (tm_max // 8) * 8)
    return int(min(_round_up(B, 8), tm_max, 2048))


def _linear_head_kernel(x_ref, w_ref, b_ref, o_ref):
    k = pl.program_id(2)

    @pl.when(k == 0)
    def _init():
        # Output block is resident across the (innermost) k axis: accumulate
        # directly into it -> no scratch, no finalize copy.
        o_ref[...] = jnp.zeros_like(o_ref)

    # Cast x to the weight dtype (bf16) in-kernel: the vcvt hides under the
    # MXU and the kernel reads f32 x straight from HBM (no separate XLA cast).
    o_ref[...] += jnp.dot(
        x_ref[...].astype(w_ref.dtype),
        w_ref[...],
        preferred_element_type=jnp.float32,
    )

    @pl.when(k == pl.num_programs(2) - 1)
    def _finalize():
        # Bias is added exactly once, at the last K step.
        o_ref[...] += b_ref[...].astype(jnp.float32)


@partial(jax.jit, static_argnames=("num_classes", "tk", "tn"))
def linear_head_forward(x: jax.Array, w_padded: jax.Array, b_padded: jax.Array,
                        *, num_classes: int, tk: int, tn: int) -> jax.Array:
    """logits = x @ W + b via a tiled Pallas TPU matmul (bf16 MXU, f32 acc)."""
    B, H = x.shape
    Hp, Cp = w_padded.shape
    assert Hp % tk == 0 and Cp % tn == 0 and H <= Hp
    assert b_padded.shape == (1, Cp)

    budget = _vmem_budget_bytes()
    tm = _choose_tm(B, tk, tn, budget)
    Bp = _round_up(B, tm)

    # Only the activations are padded per call (weights/bias padded at init).
    # Zero-padding along H is matmul-neutral; padded batch rows / class
    # columns are sliced off below, keeping every store lane-dense.
    if (Bp, Hp) != (B, H):
        x = jnp.pad(x, ((0, Bp - B), (0, Hp - H)))

    grid = (Bp // tm, Cp // tn, Hp // tk)

    # Real HBM traffic including re-streaming: W is re-read once per batch
    # tile, x once per class tile.
    bytes_accessed = (
        grid[1] * Bp * Hp * x.dtype.itemsize
        + grid[0] * Hp * Cp * w_padded.dtype.itemsize
        + Cp * b_padded.dtype.itemsize
        + Bp * Cp * 4
    )

    out = pl.pallas_call(
        _linear_head_kernel,
        out_shape=jax.ShapeDtypeStruct((Bp, Cp), jnp.float32),
        grid_spec=pltpu.PrefetchScalarGridSpec(
            num_scalar_prefetch=0,
            grid=grid,
            in_specs=[
                pl.BlockSpec((tm, tk), lambda i, j, k: (i, k)),
                pl.BlockSpec((tk, tn), lambda i, j, k: (k, j)),
                pl.BlockSpec((1, tn), lambda i, j, k: (0, j)),
            ],
            out_specs=pl.BlockSpec((tm, tn), lambda i, j, k: (i, j)),
        ),
        compiler_params=pltpu.CompilerParams(
            dimension_semantics=("parallel", "parallel", "arbitrary"),
            vmem_limit_bytes=budget,
        ),
        cost_estimate=pl.CostEstimate(
            flops=2 * Bp * Hp * Cp,
            transcendentals=0,
            bytes_accessed=bytes_accessed,
        ),
    )(x, w_padded, b_padded)

    if (Bp, Cp) != (B, num_classes):
        out = out[:B, :num_classes]
    return out


class LinearHead:
    """Concrete JAX/Pallas counterpart of the abstract PyTorch `HeadAbstract`."""

    def __init__(self, input_size: int, num_classes: int,
                 is_predict: bool = False, param_dtype=jnp.bfloat16):
        self.input_size = input_size
        self.num_classes = num_classes
        self.is_predict = is_predict

        # K/N tiles depend only on (H, C): fix them now so the weights can be
        # padded exactly once at init (hoisted out of forward()).
        self.tk, self.tn = _choose_kn_tiles(input_size, num_classes)
        Hp = _round_up(input_size, self.tk)
        Cp = _round_up(num_classes, self.tn)

        # Deterministic synthetic parameter init (nn.Linear-like shapes).
        kw, kb = jax.random.split(jax.random.PRNGKey(0))
        scale = 1.0 / jnp.sqrt(jnp.float32(input_size))
        # Weights stored in bf16: the head is W-bandwidth-bound; bf16 halves
        # the bytes and feeds the MXU natively (f32 accumulate in-kernel).
        self.w = jax.random.uniform(
            kw, (input_size, num_classes), jnp.float32, -scale, scale
        ).astype(param_dtype)
        # Bias stays f32 (tiny; added once at the finalize step).
        self.b = jax.random.uniform(kb, (1, num_classes), jnp.float32, -scale, scale)

        # Pad ONCE here (not per forward call).
        self.w_padded = jnp.pad(
            self.w, ((0, Hp - input_size), (0, Cp - num_classes)))
        self.b_padded = jnp.pad(self.b, ((0, 0), (0, Cp - num_classes)))

    def forward(self, body_output: jax.Array) -> jax.Array:
        logits = linear_head_forward(
            body_output, self.w_padded, self.b_padded,
            num_classes=self.num_classes, tk=self.tk, tn=self.tn)
        if self.is_predict:
            return self.predict(logits)[0]
        return logits

    def score(self, logits: jax.Array) -> jax.Array:
        # Softmax scores (glue-level; elementwise on the small logits tensor).
        return jax.nn.softmax(logits, axis=-1)

    def predict(self, label_logits: jax.Array):
        probs = self.score(label_logits)
        preds = jnp.argmax(label_logits, axis=-1)
        return preds, probs


if __name__ == "__main__":
    # Small but non-trivial shapes: exercise K-axis tiling (Hp=1024 -> 2 k
    # steps), sublane padding of the batch, lane padding/slicing of classes.
    batch, input_size, num_classes = 10, 1000, 300
    key = jax.random.PRNGKey(0)
    body_output = jax.random.normal(key, (batch, input_size), jnp.float32)

    head = LinearHead(input_size=input_size, num_classes=num_classes,
                      is_predict=False)
    logits = jax.block_until_ready(head.forward(body_output))

    # Cross-check against a plain-JAX reference on the same dtype path
    # (bf16 operands, f32 accumulate).
    x_bf = body_output.astype(head.w.dtype)
    ref = jnp.dot(x_bf, head.w, preferred_element_type=jnp.float32) + head.b
    assert logits.shape == (batch, num_classes)
    assert logits.dtype == jnp.float32
    assert jnp.allclose(logits, ref, atol=1e-2, rtol=1e-2), float(
        jnp.max(jnp.abs(logits - ref)))

    preds, probs = head.predict(logits)
    jax.block_until_ready(preds)
    jax.block_until_ready(probs)

    print("KERNEL_OK")
</pallas_src>

<mosaic_0001>
module attributes {stable_mosaic.version = 11 : i64} {
  func.func @_linear_head_kernel(%arg0: i32, %arg1: i32, %arg2: i32, %arg3: memref<16x512xf32, #tpu.memory_space<vmem>>, %arg4: memref<512x384xbf16, #tpu.memory_space<vmem>>, %arg5: memref<1x384xf32, #tpu.memory_space<vmem>>, %arg6: memref<16x384xf32, #tpu.memory_space<vmem>>) attributes {dimension_semantics = [#tpu.dimension_semantics<parallel>, #tpu.dimension_semantics<parallel>, #tpu.dimension_semantics<arbitrary>], iteration_bounds = array<i64: 1, 1, 2>, scalar_prefetch = 0 : i64, scratch_operands = 0 : i64, tpu.core_type = #tpu.core_type<tc>, window_params = [{transform_indices = @transform_0, window_bounds = array<i64: 16, 512>}, {transform_indices = @transform_1, window_bounds = array<i64: 512, 384>}, {transform_indices = @transform_2, window_bounds = array<i64: 1, 384>}, {transform_indices = @transform_3, window_bounds = array<i64: 16, 384>}]} {
    %c0_i32 = arith.constant 0 : i32
    %0 = arith.cmpi eq, %arg2, %c0_i32 : i32
    %1 = arith.extui %0 : i1 to i32
    %c0_i32_0 = arith.constant 0 : i32
    %2 = arith.cmpi ne, %1, %c0_i32_0 : i32
    scf.if %2 {
      %cst_9 = arith.constant 0.000000e+00 : f32
      %13 = vector.broadcast %cst_9 : f32 to vector<16x384xf32>
      %c0_10 = arith.constant 0 : index
      %c0_11 = arith.constant 0 : index
      %14 = vector.load %arg6[%c0_10, %c0_11] : memref<16x384xf32, #tpu.memory_space<vmem>>, vector<16x384xf32>
      tpu.vector_store %arg6[%c0_10, %c0_11], %13 {strides = array<i32>} : memref<16x384xf32, #tpu.memory_space<vmem>>, vector<16x384xf32>,
    } else {
    }
    %c0 = arith.constant 0 : index
    %c0_1 = arith.constant 0 : index
    %3 = vector.load %arg6[%c0, %c0_1] : memref<16x384xf32, #tpu.memory_space<vmem>>, vector<16x384xf32>
    %c0_2 = arith.constant 0 : index
    %c0_3 = arith.constant 0 : index
    %4 = vector.load %arg3[%c0_2, %c0_3] : memref<16x512xf32, #tpu.memory_space<vmem>>, vector<16x512xf32>
    %5 = arith.truncf %4 : vector<16x512xf32> to vector<16x512xbf16>
    %c0_4 = arith.constant 0 : index
    %c0_5 = arith.constant 0 : index
    %6 = vector.load %arg4[%c0_4, %c0_5] : memref<512x384xbf16, #tpu.memory_space<vmem>>, vector<512x384xbf16>
    %cst = arith.constant dense<0.000000e+00> : vector<16x384xf32>
    %7 = tpu.matmul %5, %6, %cst {dimension_numbers = #tpu.dot_dimension_numbers<[1], [0], [0], [1], [0, 0, 1, 1], [], []>} : vector<16x512xbf16>, vector<512x384xbf16>, vector<16x384xf32> -> vector<16x384xf32>
    %8 = arith.addf %3, %7 : vector<16x384xf32>
    %c0_6 = arith.constant 0 : index
    %c0_7 = arith.constant 0 : index
    %9 = vector.load %arg6[%c0_6, %c0_7] : memref<16x384xf32, #tpu.memory_space<vmem>>, vector<16x384xf32>
    tpu.vector_store %arg6[%c0_6, %c0_7], %8 {strides = array<i32>} : memref<16x384xf32, #tpu.memory_space<vmem>>, vector<16x384xf32>,
    %c1_i32 = arith.constant 1 : i32
    %10 = arith.cmpi eq, %arg2, %c1_i32 : i32
    %11 = arith.extui %10 : i1 to i32
    %c0_i32_8 = arith.constant 0 : i32
    %12 = arith.cmpi ne, %11, %c0_i32_8 : i32
    scf.if %12 {
      %c0_9 = arith.constant 0 : index
      %c0_10 = arith.constant 0 : index
      %13 = vector.load %arg6[%c0_9, %c0_10] : memref<16x384xf32, #tpu.memory_space<vmem>>, vector<16x384xf32>
      %c0_11 = arith.constant 0 : index
      %c0_12 = arith.constant 0 : index
      %14 = vector.load %arg5[%c0_11, %c0_12] : memref<1x384xf32, #tpu.memory_space<vmem>>, vector<1x384xf32>
      %15 = vector.broadcast %14 : vector<1x384xf32> to vector<16x384xf32>
      %16 = arith.addf %13, %15 : vector<16x384xf32>
      %c0_13 = arith.constant 0 : index
      %c0_14 = arith.constant 0 : index
      %17 = vector.load %arg6[%c0_13, %c0_14] : memref<16x384xf32, #tpu.memory_space<vmem>>, vector<16x384xf32>
      tpu.vector_store %arg6[%c0_13, %c0_14], %16 {strides = array<i32>} : memref<16x384xf32, #tpu.memory_space<vmem>>, vector<16x384xf32>,
    } else {
    }
    return
  }
  func.func @transform_0(%arg0: i32, %arg1: i32, %arg2: i32) -> (i32, i32) {
    %c0_i32 = arith.constant 0 : i32
    return %arg0, %arg2 : i32, i32
  }
  func.func @transform_1(%arg0: i32, %arg1: i32, %arg2: i32) -> (i32, i32) {
    %c0_i32 = arith.constant 0 : i32
    return %arg2, %arg1 : i32, i32
  }
  func.func @transform_2(%arg0: i32, %arg1: i32, %arg2: i32) -> (i32, i32) {
    %c0_i32 = arith.constant 0 : i32
    %c0_i32_0 = arith.constant 0 : i32
    return %c0_i32, %arg1 : i32, i32
  }
  func.func @transform_3(%arg0: i32, %arg1: i32, %arg2: i32) -> (i32, i32) {
    %c0_i32 = arith.constant 0 : i32
    return %arg0, %arg1 : i32, i32
  }
}

</mosaic_0001>

<bundles_post_ra>
// kernel: linear_head_forward.1
= control target key start
LH: loop header
LB: loop body
LE: loop exit
PB: predicated region body
PF: predicated region fallthrough
CT: control target
= control target key end

     0   :  { %8 = vsyncpa [#allocation4], 0  ;;  %s2050_s0 = inlined_call_operand.vmem [shape: f32[16,1024], index: 0, kind: input, shape index: {}]   ;;  %s2051_s1 = inlined_call_operand.hbm [shape: bf16[1024,384], index: 1, kind: input, shape index: {}]   ;;  %s2052_s2 = inlined_call_operand.vmem [shape: f32[1,384], index: 2, kind: input, shape index: {}]   ;;  %s2053_s3 = inlined_call_operand.hbm [shape: f32[16,384], index: 3, kind: output, shape index: {}]  }
   0x1   :  { %10 = vsyncpa [#allocation4 + $0x1], 0 }
   0x2   :  { %11 = vsyncpa [#allocation5], 0  ;;  %s1791_s12 = smov 0   ;;  %s1793_s13 = smov 0  }
   0x3   :  { %s1795_s14 = smov 0   ;;  %s1797_s15 = smov 0  }
   0x4   :  { %s1799_s16 = smov 0   ;;  %s1801_s17 = smov 0  }
   0x5 LB: > { %s1298_s18 = sadd.s32 4294967295, %s1762_s17   ;;  %s29_s19 = sadd.s32 1, %s1758_s16  ;;  %s1762_s17 = sphi %s1801_s17, %s17_s17   ;;  %s1758_s16 = sphi %s1799_s16, %s2061_s16   ;;  %s1754_s15 = sphi %s1797_s15, %s2060_s15   ;;  %s1750_s14 = sphi %s1795_s14, %s2059_s14   ;;  %s1746_s13 = sphi %s1793_s13, %s2058_s13   ;;  %s1742_s12 = sphi %s1791_s12, %s2057_s12  }
   0x6   : > { %p30_p0 = scmp.ge.s32.totalorder %s29_s19, 2  ;;  %s45_s20 = sadd.s32 1, %s1750_s14 }
   0x7   : > { %p52_p1 = scmp.ne.s32.totalorder %s1750_s14, %s1746_s13  ;;  %p53_p2 = scmp.eq.s32.totalorder %s1762_s17, 0 }
   0x8   : > { %s2063_s19 = smov (%p30_p0, %s29_s19), 0  ;;  %p86_p4 = scmp.ne.s32.totalorder %s1746_s13, %s1742_s12 }
   0x9   : > { %p1827_p3 = por %p53_p2, %p52_p1  ;;  %s41_s22 = ssub.s32 %s1758_s16, %s2063_s19 }
   0xa   : > { %p87_p5 = scmp.eq.s32.totalorder %s1298_s18, 0  ;;  %p43_p6 = scmp.eq.s32.totalorder %s41_s22, 0 }
   0xb   : > { %p1301_p8 = scmp.ge.s32.totalorder %s1762_s17, 2 }
   0xc   : > { %p1836_p7 = por %p87_p5, %p86_p4 }
   0xd   : > { %s1841_s24 = scalar_select %p43_p6, %s1750_s14, %s45_s20  }
   0xe   : > { %168 = sbr.rel (%p1301_p8) target bundleno = 55 (0x37), region = 20 }
  0x15   : > { %171 = sbr.rel (!%p1827_p3) target bundleno = 29 (0x1d), region = 24  ;;  %s173_s25 = sand.u32 (%p1827_p3), 1, %s1750_s14  }
  0x16   : > { %s1412_s26 = sshll.u32 (%p1827_p3), %s1758_s16, 5  ;;  %s1302_s27 = sshll.u32 (%p1827_p3), %s173_s25, 6 }
  0x17   : > { %s181_s30 = scalar_lea.vmem (%p1827_p3), %s2050_s0, %s1412_s26  ;;  %s175_s4 = scalar_lea.vmem (%p1827_p3), [#allocation2], %s1302_s27 }
  0x18   : > { %v194_v0 = vld [vmem:[%s181_s30] sm:$0xff] (%p1827_p3)  ;;  %v196_v1 = vld [vmem:[%s181_s30 + $0x8] sm:$0xff] (%p1827_p3)  ;;  %v198_v2 = vld [vmem:[%s181_s30 + $0x10] sm:$0xff] (%p1827_p3) }
  0x19   : > { %195 = vst [vmem:[%s175_s4] sm:$0xff] (%p1827_p3), %v194_v0  ;;  %197 = vst [vmem:[%s175_s4 + $0x8] sm:$0xff] (%p1827_p3), %v196_v1  ;;  %v200_v3 = vld [vmem:[%s181_s30 + $0x18] sm:$0xff] (%p1827_p3)  ;;  %v202_v4 = vld [vmem:[%s181_s30 + $0x40] sm:$0xff] (%p1827_p3) }
  0x1a   : > { %199 = vst [vmem:[%s175_s4 + $0x10] sm:$0xff] (%p1827_p3), %v198_v2  ;;  %v204_v5 = vld [vmem:[%s181_s30 + $0x48] sm:$0xff] (%p1827_p3)  ;;  %201 = vst [vmem:[%s175_s4 + $0x18] sm:$0xff] (%p1827_p3), %v200_v3  ;;  %v206_v6 = vld [vmem:[%s181_s30 + $0x50] sm:$0xff] (%p1827_p3) }
  0x1b   : > { %203 = vst [vmem:[%s175_s4 + $0x20] sm:$0xff] (%p1827_p3), %v202_v4  ;;  %205 = vst [vmem:[%s175_s4 + $0x28] sm:$0xff] (%p1827_p3), %v204_v5  ;;  %v208_v7 = vld [vmem:[%s181_s30 + $0x58] sm:$0xff] (%p1827_p3) }
  0x1c   : > { %207 = vst [vmem:[%s175_s4 + $0x30] sm:$0xff] %v206_v6  ;;  %209 = vst [vmem:[%s175_s4 + $0x38] sm:$0xff] %v208_v7 }
  0x1d PF: > { %s216_s5 = sand.u32 1, %s1750_s14   ;;  %s1462_s6 = smul.u32 12288, %s1758_s16 }
  0x1e   : > { %s1461_s7 = smul.u32 768, %s216_s5  ;;  %s1860_s20 = scalar_lea.sflag [#allocation4], %s216_s5 }
  0x1f   : > { %s1856_s10 = scalar_lea.hbm %s2051_s1, %s1462_s6  ;;  %s1658_s27 = scalar_lea.hbm %s2051_s1, 24576 }
  0x20   : > { %s220_s11 = scalar_lea.vmem [#allocation3], %s1461_s7  ;;  %s1654_s22 = scalar_lea.hbm %s1856_s10, 12288 }
  0x21   : > { %s230_s12 = sshll.u32 %s220_s11, 4  ;;  %p1655_p9 = scmp.ne.s32.totalorder %s1856_s10, %s1654_s22  ;;  %s1858_s12 = int_to_ptr.vmem [resolvable:$true] %s230_s12 }
  0x22   : > { %p1659_p12 = scmp.lt.u32.totalorder %s1856_s10, %s2051_s1  ;;  %p1660_p13 = scmp.lt.u32.totalorder %s1658_s27, %s1654_s22 }
  0x23   : > { %p1656_p10 = pnand %p1655_p9, %p1827_p3  ;;  %p1662_p1 = scmp.lt.u32.totalorder %s1654_s22, %s1856_s10 }
  0x24   : > { %p1661_p0 = por %p1660_p13, %p1659_p12 }
  0x25   : > { %p1657_p11 = pneg %p1656_p10 }
  0x26   : > { %p1663_p2 = por %p1662_p1, %p1661_p0 }
  0x28   : > { %p1664_p4 = pnand %p1663_p2, %p1657_p11 }
  0x2a   : > { %1667 = shalt.err (!%p1664_p4)
}
  0x2b   : > { %s1668_s30 = scalar_lea.vmem %s1858_s12, 12288  ;;  %s1764_s4 = smov [#allocation3]  }
  0x2c   : > { %p1669_p5 = scmp.ne.s32.totalorder %s1858_s12, %s1668_s30  ;;  %s1672_s5 = sshll.u32 %s1764_s4, 4  ;;  %s1673_s5 = int_to_ptr.vmem [resolvable:$false] %s1672_s5 }
  0x2d   : > { %s1674_s6 = scalar_lea.vmem %s1673_s5, 24576  ;;  %p1675_p9 = scmp.lt.s32.totalorder %s1858_s12, %s1673_s5 }
  0x2e   : > { %p1670_p6 = pnand %p1669_p5, %p1827_p3  ;;  %p1676_p10 = scmp.lt.s32.totalorder %s1674_s6, %s1668_s30 }
  0x30   : > { %p1671_p8 = pneg %p1670_p6  ;;  %p1677_p12 = por %p1676_p10, %p1675_p9 }
  0x32   : > { %p1678_p13 = pnand %p1677_p12, %p1671_p8 }
  0x34   : > { %1681 = shalt.err (!%p1678_p13)
}
  0x35   : > { %s1765_s7 = smov 192   ;;  %s1766_s8 = smov 12  }
  0x36   : > { %1464 = dma.hbm_to_vmem [thread:$0]  (%p1827_p3), %s1856_s10, 12288, %s1858_s12, %s1860_s20, %s1765_s7, %s1765_s7, %s1766_s8  }
  0x37 PF: > { %p1308_p11 = scmp.ge.s32.totalorder %s1762_s17, 1  ;;  %p238_p0 = scmp.lt.s32.totalorder %s1762_s17, 3 }
  0x39   : > { %p239_p1 = pnand %p1308_p11, %p238_p0 }
  0x3a   : > { %s245_s9 = sand.u32 (!%p239_p1), 1, %s1746_s13  }
  0x3b   : > { %242 = sbr.rel (%p239_p1) target bundleno = 459 (0x1cb), region = 51  ;;  %s1309_s11 = sshll.u32 (!%p239_p1), %s245_s9, 6 }
  0x3c   : > { %s1463_s22 = smul.u32 (!%p239_p1), 768, %s245_s9  ;;  %s1887_s25 = scalar_lea.vmem (!%p239_p1), [#allocation2], %s1309_s11 }
  0x3d   : > { %s252_s26 = scalar_lea.sflag (!%p239_p1), [#allocation4], %s245_s9 }
  0x3e   : > { %s1889_s27 = scalar_lea.vmem (!%p239_p1), [#allocation3], %s1463_s22 }
  0x42   : > { %1733 = dma.done.wait (%p1836_p7), %s252_s26, 12288  }
  0x43   : > { %1735 = vsyncadd (%p1836_p7), %s252_s26, 4294955008  ;;  %p1310_p3 = scmp.ne.s32.totalorder %s1754_s15, 0 }
  0x44   : > { %v1767_v8 = vmov (!%p1310_p3), 0.0  }
  0x45   : > { %296 = sbr.rel (%p1310_p3) target bundleno = 76 (0x4c), region = 63  ;;  %297 = vst [vmem:[#allocation6] sm:$0xff] (!%p1310_p3), %v1767_v8  ;;  %298 = vst [vmem:[#allocation6 + $0x8] sm:$0xff] (!%p1310_p3), %v1767_v8 }
  0x46   : > { %299 = vst [vmem:[#allocation6 + $0x10] sm:$0xff] (!%p1310_p3), %v1767_v8  ;;  %300 = vst [vmem:[#allocation6 + $0x18] sm:$0xff] (!%p1310_p3), %v1767_v8 }
  0x47   : > { %301 = vst [vmem:[#allocation6 + $0x20] sm:$0xff] (!%p1310_p3), %v1767_v8  ;;  %302 = vst [vmem:[#allocation6 + $0x28] sm:$0xff] (!%p1310_p3), %v1767_v8 }
  0x4c PF: > { %v1526_v9 = vld [vmem:[%s1889_s27 + $0x4] ss:$12 sps:$4 sm:$0xff]   ;;  %v1528_v10 = vld [vmem:[%s1889_s27] ss:$12 sps:$4 sm:$0xff]   ;;  %v1529_v11 = vld [vmem:[%s1889_s27 + $0x1c] ss:$12 sps:$4 sm:$0xff]  }
  0x4d   : > { %961 = vmatprep.subr.bf16.mxu0 %v1526_v9  ;;  %v1531_v12 = vld [vmem:[%s1889_s27 + $0x18] ss:$12 sps:$4 sm:$0xff]   ;;  %v1532_v13 = vld [vmem:[%s1889_s27 + $0x34] ss:$12 sps:$4 sm:$0xff]   ;;  %v1534_v14 = vld [vmem:[%s1889_s27 + $0x30] ss:$12 sps:$4 sm:$0xff]  }
  0x4e   : > { %962 = vmatpush1.bf16.msra.mxu0 %v1528_v10  ;;  %v1535_v15 = vld [vmem:[%s1889_s27 + $0x4c] ss:$12 sps:$4 sm:$0xff]   ;;  %v1537_v16 = vld [vmem:[%s1889_s27 + $0x48] ss:$12 sps:$4 sm:$0xff]   ;;  %v1538_v19 = vld [vmem:[%s1889_s27 + $0x64] ss:$12 sps:$4 sm:$0xff]  }
  0x4f   : > { %963 = vmatprep.subr.bf16.mxu0 %v1529_v11  ;;  %v1547_v17 = vld [vmem:[%s1889_s27 + $0xc8] ss:$12 sps:$4 sm:$0xff]   ;;  %v1552_v20 = vld [vmem:[%s1889_s27 + $0xe0] ss:$12 sps:$4 sm:$0xff]   ;;  %v1557_v24 = vld [vmem:[%s1889_s27 + $0xf8] ss:$12 sps:$4 sm:$0xff]  }
  0x50   : > { %v1548_v18 = vld [vmem:[%s1889_s27 + $0x8] ss:$12 sps:$4 sm:$0xff]   ;;  %1413 = vmatprep.subr.bf16.mxu1 %v1547_v17  ;;  %v1553_v21 = vld [vmem:[%s1889_s27 + $0x20] ss:$12 sps:$4 sm:$0xff]   ;;  %v1558_v25 = vld [vmem:[%s1889_s27 + $0x38] ss:$12 sps:$4 sm:$0xff]  }
  0x51   : > { %1414 = vmatpush3.bf16.msra.mxu1 %v1548_v18  ;;  %v1540_v22 = vld [vmem:[%s1889_s27 + $0x60] ss:$12 sps:$4 sm:$0xff]   ;;  %v1541_v23 = vld [vmem:[%s1889_s27 + $0x7c] ss:$12 sps:$4 sm:$0xff]   ;;  %v1543_v26 = vld [vmem:[%s1889_s27 + $0x78] ss:$12 sps:$4 sm:$0xff]  }
  0x52   : > { %964 = vmatpush1.bf16.msra.mxu0 %v1531_v12  ;;  %1415 = vmatprep.subr.bf16.mxu1 %v1552_v20  ;;  %v1544_v27 = vld [vmem:[%s1889_s27 + $0x94] ss:$12 sps:$4 sm:$0xff]   ;;  %v1562_v28 = vld [vmem:[%s1889_s27 + $0x110] ss:$12 sps:$4 sm:$0xff]   ;;  %v1549_v32 = vld [vmem:[%s1889_s27 + $0xac] ss:$12 sps:$4 sm:$0xff]  }
  0x53   : > { %965 = vmatprep.subr.bf16.mxu0 %v1532_v13  ;;  %v1563_v29 = vld [vmem:[%s1889_s27 + $0x50] ss:$12 sps:$4 sm:$0xff]   ;;  %v1567_v31 = vld [vmem:[%s1889_s27 + $0x128] ss:$12 sps:$4 sm:$0xff]   ;;  %v1572_v34 = vld [vmem:[%s1889_s27 + $0x140] ss:$12 sps:$4 sm:$0xff]  }
  0x54   : > { %v1546_v30 = vld [vmem:[%s1889_s27 + $0x90] ss:$12 sps:$4 sm:$0xff]   ;;  %v1568_v33 = vld [vmem:[%s1889_s27 + $0x68] ss:$12 sps:$4 sm:$0xff]   ;;  %v1573_v37 = vld [vmem:[%s1889_s27 + $0x80] ss:$12 sps:$4 sm:$0xff]  }
  0x55   : > { %1416 = vmatpush3.bf16.msra.mxu1 %v1553_v21  ;;  %v1551_v35 = vld [vmem:[%s1889_s27 + $0xa8] ss:$12 sps:$4 sm:$0xff]   ;;  %v1554_v36 = vld [vmem:[%s1889_s27 + $0xc4] ss:$12 sps:$4 sm:$0xff]   ;;  %v1556_v39 = vld [vmem:[%s1889_s27 + $0xc0] ss:$12 sps:$4 sm:$0xff]  }
  0x56   : > { %966 = vmatpush1.bf16.msra.mxu0 %v1534_v14  ;;  %1417 = vmatprep.subr.bf16.mxu1 %v1557_v24  ;;  %v1577_v38 = vld [vmem:[%s1889_s27 + $0x158] ss:$12 sps:$4 sm:$0xff]   ;;  %v1559_v40 = vld [vmem:[%s1889_s27 + $0xdc] ss:$12 sps:$4 sm:$0xff]   ;;  %v1564_v44 = vld [vmem:[%s1889_s27 + $0xf4] ss:$12 sps:$4 sm:$0xff]  }
  0x57   : > { %967 = vmatprep.subr.bf16.mxu0 %v1535_v15  ;;  %v1561_v41 = vld [vmem:[%s1889_s27 + $0xd8] ss:$12 sps:$4 sm:$0xff]   ;;  %v1582_v43 = vld [vmem:[%s1889_s27 + $0x170] ss:$12 sps:$4 sm:$0xff]   ;;  %v310_v46 = vld [vmem:[%s1887_s25 + $0x8] sm:$0xff]  ;;  %p1407_p7 = scmp.ne.s32.totalorder %s1754_s15, 1 }
  0x58   : > { %v1578_v42 = vld [vmem:[%s1889_s27 + $0x98] ss:$12 sps:$4 sm:$0xff]   ;;  %v1583_v45 = vld [vmem:[%s1889_s27 + $0xb0] ss:$12 sps:$4 sm:$0xff]   ;;  %v314_v47 = vld [vmem:[%s1887_s25 + $0x28] sm:$0xff] }
  0x59   : > { %1418 = vmatpush3.bf16.msra.mxu1 %v1558_v25  ;;  %v318_v48 = vpack.c.bf16 %v314_v47, %v310_v46  ;;  %v1587_v49 = vld [vmem:[%s1889_s27 + $0x248] ss:$12 sps:$4 sm:$0xff]   ;;  %v309_v50 = vld [vmem:[%s1887_s25] sm:$0xff]  ;;  %v1566_v52 = vld [vmem:[%s1889_s27 + $0xf0] ss:$12 sps:$4 sm:$0xff]  }
  0x5a   : > { %968 = vmatpush1.bf16.msra.mxu0 %v1537_v16  ;;  %1419 = vmatprep.subr.bf16.mxu1 %v1562_v28  ;;  %v313_v51 = vld [vmem:[%s1887_s25 + $0x20] sm:$0xff]  ;;  %v1569_v53 = vld [vmem:[%s1889_s27 + $0x10c] ss:$12 sps:$4 sm:$0xff]   ;;  %v1588_v55 = vld [vmem:[%s1889_s27 + $0x188] ss:$12 sps:$4 sm:$0xff]  }
  0x5b   : > { %969 = vmatprep.subr.bf16.mxu0 %v1538_v19  ;;  %1079 = vmatprep.mubr.bf16.mxu1 %v318_v48  ;;  %v317_v54 = vpack.c.bf16 %v313_v51, %v309_v50  ;;  %v1592_v56 = vld [vmem:[%s1889_s27 + $0x260] ss:$12 sps:$4 sm:$0xff]   ;;  %v1571_v57 = vld [vmem:[%s1889_s27 + $0x108] ss:$12 sps:$4 sm:$0xff]   ;;  %v1574_v58 = vld [vmem:[%s1889_s27 + $0x124] ss:$12 sps:$4 sm:$0xff]  }
  0x5c   : > { %993 = vmatprep.mubr.bf16.mxu0 %v318_v48  ;;  %v1593_v59 = vld [vmem:[%s1889_s27 + $0x1a0] ss:$12 sps:$4 sm:$0xff]   ;;  %v1597_v60 = vld [vmem:[%s1889_s27 + $0x278] ss:$12 sps:$4 sm:$0xff]   ;;  %v1579_v62 = vld [vmem:[%s1889_s27 + $0x13c] ss:$12 sps:$4 sm:$0xff]  }
  0x5d   : > { %1420 = vmatpush3.bf16.msra.mxu1 %v1563_v29  ;;  %v1576_v61 = vld [vmem:[%s1889_s27 + $0x120] ss:$12 sps:$4 sm:$0xff]   ;;  %v1598_v63 = vld [vmem:[%s1889_s27 + $0x1b8] ss:$12 sps:$4 sm:$0xff]   ;;  %v1602_v0 = vld [vmem:[%s1889_s27 + $0x290] ss:$12 sps:$4 sm:$0xff]  }
  0x5e   : > { %970 = vmatpush1.bf16.msra.mxu0 %v1540_v22  ;;  %1421 = vmatprep.subr.bf16.mxu1 %v1567_v31  ;;  %v1581_v1 = vld [vmem:[%s1889_s27 + $0x138] ss:$12 sps:$4 sm:$0xff]   ;;  %v1584_v2 = vld [vmem:[%s1889_s27 + $0x154] ss:$12 sps:$4 sm:$0xff]   ;;  %v1603_v3 = vld [vmem:[%s1889_s27 + $0x1d0] ss:$12 sps:$4 sm:$0xff]  }
  0x5f   : > { %971 = vmatprep.subr.bf16.mxu0 %v1541_v23  ;;  %v1607_v4 = vld [vmem:[%s1889_s27 + $0x2a8] ss:$12 sps:$4 sm:$0xff]   ;;  %v1586_v5 = vld [vmem:[%s1889_s27 + $0x150] ss:$12 sps:$4 sm:$0xff]   ;;  %v1589_v6 = vld [vmem:[%s1889_s27 + $0x16c] ss:$12 sps:$4 sm:$0xff]  }
  0x60   : > { %v1608_v7 = vld [vmem:[%s1889_s27 + $0x1e8] ss:$12 sps:$4 sm:$0xff]   ;;  %v1612_v8 = vld [vmem:[%s1889_s27 + $0x2c0] ss:$12 sps:$4 sm:$0xff]   ;;  %v1596_v10 = vld [vmem:[%s1889_s27 + $0x184] ss:$12 sps:$4 sm:$0xff]  }
  0x61   : > { %1422 = vmatpush3.bf16.msra.mxu1 %v1568_v33  ;;  %v1591_v9 = vld [vmem:[%s1889_s27 + $0x168] ss:$12 sps:$4 sm:$0xff]   ;;  %v1613_v11 = vld [vmem:[%s1889_s27 + $0x200] ss:$12 sps:$4 sm:$0xff]   ;;  %v1617_v12 = vld [vmem:[%s1889_s27 + $0x2d8] ss:$12 sps:$4 sm:$0xff]  }
  0x62   : > { %972 = vmatpush1.bf16.msra.mxu0 %v1543_v26  ;;  %1423 = vmatprep.subr.bf16.mxu1 %v1572_v34  ;;  %v1594_v13 = vld [vmem:[%s1889_s27 + $0x180] ss:$12 sps:$4 sm:$0xff]   ;;  %v1601_v14 = vld [vmem:[%s1889_s27 + $0x19c] ss:$12 sps:$4 sm:$0xff]   ;;  %v1618_v17 = vld [vmem:[%s1889_s27 + $0x218] ss:$12 sps:$4 sm:$0xff]  }
  0x63   : > { %973 = vmatprep.subr.bf16.mxu0 %v1544_v27  ;;  %v312_v15 = vld [vmem:[%s1887_s25 + $0x18] sm:$0xff]  ;;  %v1606_v21 = vld [vmem:[%s1889_s27 + $0x1b4] ss:$12 sps:$4 sm:$0xff]   ;;  %v1616_v29 = vld [vmem:[%s1889_s27 + $0x1e4] ss:$12 sps:$4 sm:$0xff]  }
  0x64   : > { %v316_v16 = vld [vmem:[%s1887_s25 + $0x38] sm:$0xff]  ;;  %v311_v23 = vld [vmem:[%s1887_s25 + $0x10] sm:$0xff]  ;;  %v1642_v46 = vld [vmem:[%s1889_s27 + $0x2a0] ss:$12 sps:$4 sm:$0xff]  }
  0x65   : > { %1424 = vmatpush3.bf16.msra.mxu1 %v1573_v37  ;;  %v320_v18 = vpack.c.bf16 %v316_v16, %v312_v15  ;;  %v1599_v19 = vld [vmem:[%s1889_s27 + $0x198] ss:$12 sps:$4 sm:$0xff]   ;;  %v1622_v20 = vld [vmem:[%s1889_s27 + $0x2f0] ss:$12 sps:$4 sm:$0xff]   ;;  %v1609_v28 = vld [vmem:[%s1889_s27 + $0x1c8] ss:$12 sps:$4 sm:$0xff]  }
  0x66   : > { %974 = vmatpush1.bf16.msra.mxu0 %v1546_v30  ;;  %1425 = vmatprep.subr.bf16.mxu1 %v1577_v38  ;;  %v1623_v22 = vld [vmem:[%s1889_s27 + $0x230] ss:$12 sps:$4 sm:$0xff]   ;;  %v1611_v26 = vld [vmem:[%s1889_s27 + $0x1cc] ss:$12 sps:$4 sm:$0xff]   ;;  %v1626_v33 = vld [vmem:[%s1889_s27 + $0x214] ss:$12 sps:$4 sm:$0xff]  }
  0x67   : > { %975 = vmatprep.subr.bf16.mxu0 %v1549_v32  ;;  %v315_v24 = vld [vmem:[%s1887_s25 + $0x30] sm:$0xff]  ;;  %v1614_v30 = vld [vmem:[%s1889_s27 + $0x1e0] ss:$12 sps:$4 sm:$0xff]   ;;  %v1621_v31 = vld [vmem:[%s1889_s27 + $0x1fc] ss:$12 sps:$4 sm:$0xff]  }
  0x68   : > { %v1604_v25 = vld [vmem:[%s1889_s27 + $0x1b0] ss:$12 sps:$4 sm:$0xff]   ;;  %v319_v27 = vpack.c.bf16 %v315_v24, %v311_v23  ;;  %v1619_v32 = vld [vmem:[%s1889_s27 + $0x1f8] ss:$12 sps:$4 sm:$0xff]   ;;  %v1630_v38 = vld [vmem:[%s1889_s27 + $0x240] ss:$12 sps:$4 sm:$0xff]  }
  0x69   : > { %1426 = vmatpush3.bf16.msra.mxu1 %v1578_v42  ;;  %v1624_v34 = vld [vmem:[%s1889_s27 + $0x210] ss:$12 sps:$4 sm:$0xff]   ;;  %v1645_v48 = vld [vmem:[%s1889_s27 + $0x2b8] ss:$12 sps:$4 sm:$0xff]  }
  0x6a   : > { %976 = vmatpush1.bf16.msra.mxu0 %v1551_v35  ;;  %1427 = vmatprep.subr.bf16.mxu1 %v1582_v43  ;;  %v1629_v35 = vld [vmem:[%s1889_s27 + $0x22c] ss:$12 sps:$4 sm:$0xff]   ;;  %v1632_v37 = vld [vmem:[%s1889_s27 + $0x244] ss:$12 sps:$4 sm:$0xff]   ;;  %v1647_v47 = vld [vmem:[%s1889_s27 + $0x2bc] ss:$12 sps:$4 sm:$0xff]  }
  0x6b   : > { %977 = vmatprep.subr.bf16.mxu0 %v1554_v36  ;;  %v1627_v36 = vld [vmem:[%s1889_s27 + $0x228] ss:$12 sps:$4 sm:$0xff]   ;;  %v1636_v42 = vld [vmem:[%s1889_s27 + $0x270] ss:$12 sps:$4 sm:$0xff]   ;;  %v1641_v43 = vld [vmem:[%s1889_s27 + $0x28c] ss:$12 sps:$4 sm:$0xff]  }
  0x6c   : > { %v1648_v50 = vld [vmem:[%s1889_s27 + $0x2d0] ss:$12 sps:$4 sm:$0xff]   ;;  %v1653_v51 = vld [vmem:[%s1889_s27 + $0x2ec] ss:$12 sps:$4 sm:$0xff]  }
  0x6d   : > { %1428 = vmatpush3.bf16.msra.mxu1 %v1583_v45  ;;  %v1644_v45 = vld [vmem:[%s1889_s27 + $0x2a4] ss:$12 sps:$4 sm:$0xff]  }
  0x6e   : > { %978 = vmatpush1.bf16.msra.mxu0 %v1556_v39  ;;  %1435 = vmatprep.subr.bf16.mxu1 %v1587_v49  ;;  %v1635_v39 = vld [vmem:[%s1889_s27 + $0x25c] ss:$12 sps:$4 sm:$0xff]   ;;  %v1650_v49 = vld [vmem:[%s1889_s27 + $0x2d4] ss:$12 sps:$4 sm:$0xff]  }
  0x6f   : > { %979 = vmatprep.subr.bf16.mxu0 %v1559_v40  ;;  %v1633_v40 = vld [vmem:[%s1889_s27 + $0x258] ss:$12 sps:$4 sm:$0xff]  }
  0x70   : > { %1080 = vmatmul.mubr.bf16.vlgmr.msra.gmra.mrb[0].mxu1 %v317_v54 }
  0x71   : > { %1436 = vmatpush3.bf16.msra.mxu1 %v1588_v55  ;;  %1120 = vmatprep.mubr.bf16.mxu1 %v320_v18 }
  0x72   : > { %980 = vmatpush1.bf16.msra.mxu0 %v1561_v41  ;;  %1437 = vmatprep.subr.bf16.mxu1 %v1592_v56  ;;  %v1638_v41 = vld [vmem:[%s1889_s27 + $0x274] ss:$12 sps:$4 sm:$0xff]  }
  0x73   : > { %981 = vmatprep.subr.bf16.mxu0 %v1564_v44  ;;  %v1639_v44 = vld [vmem:[%s1889_s27 + $0x288] ss:$12 sps:$4 sm:$0xff]  }
  0x75   : > { %1438 = vmatpush3.bf16.msra.mxu1 %v1593_v59 }
  0x76   : > { %982 = vmatpush1.bf16.msra.mxu0 %v1566_v52  ;;  %1439 = vmatprep.subr.bf16.mxu1 %v1597_v60  ;;  %v1651_v52 = vld [vmem:[%s1889_s27 + $0x2e8] ss:$12 sps:$4 sm:$0xff]  }
  0x77   : > { %983 = vmatprep.subr.bf16.mxu0 %v1569_v53 }
  0x79   : > { %1440 = vmatpush3.bf16.msra.mxu1 %v1598_v63  ;;  %v305_v63 = vld [vmem:[#allocation6 + $0x10] sm:$0xff] }
  0x7a   : > { %984 = vmatpush1.bf16.msra.mxu0 %v1571_v57  ;;  %1441 = vmatprep.subr.bf16.mxu1 %v1602_v0 }
  0x7b   : > { %985 = vmatprep.subr.bf16.mxu0 %v1574_v58 }
  0x7d   : > { %1442 = vmatpush3.bf16.msra.mxu1 %v1603_v3  ;;  %v308_v3 = vld [vmem:[#allocation6 + $0x28] sm:$0xff] }
  0x7e   : > { %986 = vmatpush1.bf16.msra.mxu0 %v1576_v61  ;;  %1443 = vmatprep.subr.bf16.mxu1 %v1607_v4 }
  0x7f   : > { %987 = vmatprep.subr.bf16.mxu0 %v1579_v62 }
  0x81   : > { %1444 = vmatpush3.bf16.msra.mxu1 %v1608_v7  ;;  %v303_v7 = vld [vmem:[#allocation6] sm:$0xff] }
  0x82   : > { %988 = vmatpush1.bf16.msra.mxu0 %v1581_v1  ;;  %1445 = vmatprep.subr.bf16.mxu1 %v1612_v8  ;;  %v304_v8 = vld [vmem:[#allocation6 + $0x8] sm:$0xff] }
  0x83   : > { %989 = vmatprep.subr.bf16.mxu0 %v1584_v2 }
  0x85   : > { %1446 = vmatpush3.bf16.msra.mxu1 %v1613_v11 }
  0x86   : > { %990 = vmatpush1.bf16.msra.mxu0 %v1586_v5  ;;  %1447 = vmatprep.subr.bf16.mxu1 %v1617_v12 }
  0x87   : > { %991 = vmatprep.subr.bf16.mxu0 %v1589_v6 }
  0x89   : > { %1448 = vmatpush3.bf16.msra.mxu1 %v1618_v17 }
  0x8a   : > { %992 = vmatpush1.bf16.msra.mxu0 %v1591_v9  ;;  %1449 = vmatprep.subr.bf16.mxu1 %v1622_v20 }
  0x8b   : > { %1004 = vmatprep.subr.bf16.mxu0 %v1596_v10  ;;  %v306_v10 = vld [vmem:[#allocation6 + $0x18] sm:$0xff] }
  0x8d   : > { %994 = vmatmul.mubr.bf16.vlgmr.msra.gmra.mrb[0].mxu0 %v317_v54  ;;  %1450 = vmatpush3.bf16.msra.mxu1 %v1623_v22 }
  0x8e   : > { %1005 = vmatpush1.bf16.msra.mxu0 %v1594_v13  ;;  %1036 = vmatprep.mubr.bf16.mxu0 %v320_v18  ;;  %v307_v13 = vld [vmem:[#allocation6 + $0x20] sm:$0xff] }
  0x8f   : > { %1006 = vmatprep.subr.bf16.mxu0 %v1601_v14 }
  0x90   : > { %1121 = vmatmul.mubr.bf16.vlgmr.msra.gmra.mrb[4].mxu1 %v319_v27 }
  0x92   : > { %1007 = vmatpush1.bf16.msra.mxu0 %v1599_v19  ;;  %v1153_v19 = vlaneseq (!%p1407_p7) }
  0x93   : > { %1008 = vmatprep.subr.bf16.mxu0 %v1606_v21  ;;  %v1151_v21 = vld [vmem:[%s2052_s2] sm:$0x7] (!%p1407_p7) }
  0x94   : > { %v1154_v20 = vshrl.u32 (!%p1407_p7), %v1153_v19, 7 }
  0x96   : > { %1009 = vmatpush1.bf16.msra.mxu0 %v1604_v25  ;;  %v1155_v23 = vsub.s32 (!%p1407_p7), 0, %v1154_v20  ;;  %v1159_v24 = vsub.s32 (!%p1407_p7), 1, %v1154_v20  ;;  %v1163_v25 = vsub.s32 (!%p1407_p7), 2, %v1154_v20 }
  0x97   : > { %1010 = vmatprep.subr.bf16.mxu0 %v1611_v26 }
  0x9a   : > { %1011 = vmatpush1.bf16.msra.mxu0 %v1609_v28 }
  0x9b   : > { %1012 = vmatprep.subr.bf16.mxu0 %v1616_v29  ;;  %v1156_v29 = vrot.slane (!%p1407_p7), %v1151_v21, %v1155_v23 }
  0x9e   : > { %1013 = vmatpush1.bf16.msra.mxu0 %v1614_v30  ;;  %v1160_v30 = vrot.slane (!%p1407_p7), %v1151_v21, %v1159_v24 }
  0x9f   : > { %1014 = vmatprep.subr.bf16.mxu0 %v1621_v31  ;;  %v1164_v31 = vrot.slane (!%p1407_p7), %v1151_v21, %v1163_v25 }
  0xa2   : > { %1015 = vmatpush1.bf16.msra.mxu0 %v1619_v32 }
  0xa3   : > { %1016 = vmatprep.subr.bf16.mxu0 %v1626_v33 }
  0xa6   : > { %1017 = vmatpush1.bf16.msra.mxu0 %v1624_v34 }
  0xa7   : > { %1018 = vmatprep.subr.bf16.mxu0 %v1629_v35 }
  0xaa   : > { %1019 = vmatpush1.bf16.msra.mxu0 %v1627_v36 }
  0xab   : > { %1020 = vmatprep.subr.bf16.mxu0 %v1632_v37 }
  0xae   : > { %1021 = vmatpush1.bf16.msra.mxu0 %v1630_v38 }
  0xaf   : > { %1022 = vmatprep.subr.bf16.mxu0 %v1635_v39 }
  0xb2   : > { %1023 = vmatpush1.bf16.msra.mxu0 %v1633_v40 }
  0xb3   : > { %1024 = vmatprep.subr.bf16.mxu0 %v1638_v41 }
  0xb6   : > { %1025 = vmatpush1.bf16.msra.mxu0 %v1636_v42 }
  0xb7   : > { %1026 = vmatprep.subr.bf16.mxu0 %v1641_v43 }
  0xba   : > { %1027 = vmatpush1.bf16.msra.mxu0 %v1639_v44 }
  0xbb   : > { %1028 = vmatprep.subr.bf16.mxu0 %v1644_v45 }
  0xbe   : > { %1029 = vmatpush1.bf16.msra.mxu0 %v1642_v46 }
  0xbf   : > { %1030 = vmatprep.subr.bf16.mxu0 %v1647_v47 }
  0xc2   : > { %1031 = vmatpush1.bf16.msra.mxu0 %v1645_v48 }
  0xc3   : > { %1032 = vmatprep.subr.bf16.mxu0 %v1650_v49 }
  0xc6   : > { %1033 = vmatpush1.bf16.msra.mxu0 %v1648_v50 }
  0xc7   : > { %1034 = vmatprep.subr.bf16.mxu0 %v1653_v51 }
  0xca   : > { %1035 = vmatpush1.bf16.msra.mxu0 %v1651_v52 }
  0xcd   : > { %1037 = vmatmul.mubr.bf16.vlgmr.msra.gmra.mrb[0].mxu0 %v319_v27 }
 0x143   : > { %v1429_v53 = vpop.f32.mrb[0].mxu1 }
 0x144   : > { %v1430_v54 = vpop.f32.mrb[1].mxu1 }
 0x145   : > { %v1431_v55 = vadd.f32 %v1430_v54, %v1429_v53  ;;  %v1432_v56 = vpop.f32.mrb[2].mxu1 }
 0x146   : > { %v1433_v57 = vpop.f32.mrb[3].mxu1 }
 0x147   : > { %v1434_v58 = vadd.f32 %v1433_v57, %v1432_v56 }
 0x163   : > { %v1451_v59 = vpop.f32.mrb[4].mxu1 }
 0x164   : > { %v1452_v60 = vpop.f32.mrb[5].mxu1 }
 0x165   : > { %v1453_v61 = vadd.f32 %v1452_v60, %v1451_v59  ;;  %v1454_v62 = vpop.f32.mrb[6].mxu1 }
 0x166   : > { %v1455_v0 = vpop.f32.mrb[7].mxu1 }
 0x167   : > { %v1123_v1 = vadd.f32 %v1453_v61, %v1431_v55  ;;  %v1456_v2 = vadd.f32 %v1455_v0, %v1454_v62 }
 0x169   : > { %v1131_v4 = vadd.f32 %v1123_v1, %v305_v63  ;;  %v1126_v5 = vadd.f32 %v1456_v2, %v1434_v58 }
 0x16b   : > { %1137 = vst [vmem:[#allocation6 + $0x10] sm:$0xff] %v1131_v4  ;;  %v1134_v6 = vadd.f32 %v1126_v5, %v308_v3 }
 0x16d   : > { %1140 = vst [vmem:[#allocation6 + $0x28] sm:$0xff] %v1134_v6 }
 0x172   : > { %v1147_v27 = vld [vmem:[#allocation6 + $0x10] sm:$0xff] (!%p1407_p7) }
 0x173   : > { %v1170_v36 = vadd.f32 (!%p1407_p7), %v1164_v31, %v1147_v27 }
 0x174   : > { %v1150_v33 = vld [vmem:[#allocation6 + $0x28] sm:$0xff] (!%p1407_p7) }
 0x175   : > { %v1173_v39 = vadd.f32 (!%p1407_p7), %v1164_v31, %v1150_v33  ;;  %1176 = vst [vmem:[#allocation6 + $0x10] sm:$0xff] (!%p1407_p7), %v1170_v36 }
 0x177   : > { %1179 = vst [vmem:[#allocation6 + $0x28] sm:$0xff] (!%p1407_p7), %v1173_v39 }
 0x1a0   : > { %v1038_v9 = vpop.f32.mrb[0].mxu0  ;;  %1144 = sbr.rel (%p1407_p7) target bundleno = 433 (0x1b1), region = 67 }
 0x1a1   : > { %v1129_v11 = vadd.f32 %v1038_v9, %v303_v7  ;;  %v1040_v12 = vpop.f32.mrb[1].mxu0 }
 0x1a2   : > { %v1130_v14 = vadd.f32 %v1040_v12, %v304_v8  ;;  %v1042_v15 = vpop.f32.mrb[2].mxu0 }
 0x1a3   : > { %1135 = vst [vmem:[#allocation6] sm:$0xff] %v1129_v11  ;;  %v1132_v16 = vadd.f32 %v1042_v15, %v306_v10  ;;  %v1044_v17 = vpop.f32.mrb[3].mxu0 }
 0x1a4   : > { %1136 = vst [vmem:[#allocation6 + $0x8] sm:$0xff] %v1130_v14  ;;  %v1133_v18 = vadd.f32 %v1044_v17, %v307_v13 }
 0x1a5   : > { %1138 = vst [vmem:[#allocation6 + $0x18] sm:$0xff] %v1132_v16 }
 0x1a6   : > { %1139 = vst [vmem:[#allocation6 + $0x20] sm:$0xff] %v1133_v18 }
 0x1aa   : > { %v1145_v22 = vld [vmem:[#allocation6] sm:$0xff] }
 0x1ab   : > { %v1146_v26 = vld [vmem:[#allocation6 + $0x8] sm:$0xff]  ;;  %v1168_v34 = vadd.f32 %v1156_v29, %v1145_v22 }
 0x1ac   : > { %v1148_v28 = vld [vmem:[#allocation6 + $0x18] sm:$0xff]  ;;  %v1169_v35 = vadd.f32 %v1160_v30, %v1146_v26 }
 0x1ad   : > { %v1149_v32 = vld [vmem:[#allocation6 + $0x20] sm:$0xff]  ;;  %v1171_v37 = vadd.f32 %v1156_v29, %v1148_v28  ;;  %1174 = vst [vmem:[#allocation6] sm:$0xff] %v1168_v34 }
 0x1ae   : > { %v1172_v38 = vadd.f32 %v1160_v30, %v1149_v32  ;;  %1175 = vst [vmem:[#allocation6 + $0x8] sm:$0xff] %v1169_v35 }
 0x1af   : > { %1177 = vst [vmem:[#allocation6 + $0x18] sm:$0xff] %v1171_v37 }
 0x1b0   : > { %1178 = vst [vmem:[#allocation6 + $0x20] sm:$0xff] %v1172_v38 }
 0x1b1 PF: > { %p2006_p2 = scmp.eq.s32.totalorder %s1298_s18, 1  ;;  %s1768_s10 = smov [#allocation6]  }
 0x1b2   : > { %s1192_s12 = sshll.u32 %s1768_s10, 4  ;;  %s1193_s12 = int_to_ptr.vmem [resolvable:$true] %s1192_s12 }
 0x1b3   : > { %s1682_s20 = scalar_lea.vmem %s1193_s12, 768  ;;  %p1689_p8 = scmp.lt.s32.totalorder %s1193_s12, %s1193_s12 }
 0x1b4   : > { %p1683_p4 = scmp.ne.s32.totalorder %s1193_s12, %s1682_s20  ;;  %p1690_p9 = scmp.lt.s32.totalorder %s1682_s20, %s1682_s20 }
 0x1b6   : > { %p1684_p5 = pnand %p1683_p4, %p2006_p2  ;;  %p1691_p10 = por %p1690_p9, %p1689_p8 }
 0x1b8   : > { %p1685_p6 = pneg %p1684_p5 }
 0x1ba   : > { %p1692_p12 = pnand %p1691_p10, %p1685_p6 }
 0x1bc   : > { %1695 = shalt.err (!%p1692_p12)
}
 0x1bd   : > { %s1696_s18 = scalar_lea.hbm %s2053_s3, 768 }
 0x1be   : > { %p1697_p13 = scmp.ne.s32.totalorder %s2053_s3, %s1696_s18  ;;  %p1702_p1 = scmp.lt.u32.totalorder %s1696_s18, %s2053_s3 }
 0x1c0   : > { %p1698_p11 = pnand %p1697_p13, %p2006_p2 }
 0x1c2   : > { %p1699_p0 = pneg %p1698_p11 }
 0x1c4   : > { %p1704_p3 = pnand %p1702_p1, %p1699_p0 }
 0x1c6   : > { %1707 = shalt.err (!%p1704_p3)
}
 0x1c7   : > { %s1769_s7 = smov 384   ;;  %s1770_s8 = smov 24  }
 0x1c8   : > { %1467 = dma.vmem_to_hbm [thread:$0]  (%p2006_p2), %s1193_s12, 768, %s2053_s3, [#allocation5], %s1769_s7, %s1769_s7, %s1770_s8  }
 0x1c9   : > { %1737 = dma.done.wait (%p2006_p2), [#allocation5], 768  }
 0x1ca   : > { %1739 = vsyncadd (%p2006_p2), [#allocation5], 4294966528 }
 0x1cb PF: > { %s17_s17 = sadd.s32 1, %s1762_s17   ;;  %s2057_s12 = smov %s1746_s13 }
 0x1cc   : > { %p14_p7 = scmp.ge.s32.totalorder %s17_s17, 4   ;;  %s2058_s13 = smov %s1750_s14 }
 0x1cd   : > { %s2059_s14 = smov %s1841_s24  ;;  %s2060_s15 = smov %s1758_s16 }
 0x1ce   : > { %s2061_s16 = smov %s2063_s19  ;;  %16 = sbr.rel (!%p14_p7) target bundleno = 5 (0x5), region = 112 }
 0x1d5   :  { %1208 = vsyncpa [#allocation4], 1 }
 0x1d6   :  { %1210 = vsyncpa [#allocation4 + $0x1], 1 }
 0x1d7   :  { %1211 = vsyncpa [#allocation5], 1 }
 0x1d8   :  { %1213 = vsyncpa [#allocation5 + $0x1], 1 }

</bundles_post_ra>
